<compile_context>
chip_gen: v7x
topology: tpu7x:2x2x1
jax: 0.10.0
libtpu: 0.0.40
codegen_flags: <defaults>
</compile_context>

<pallas_src>
import functools

import jax
import jax.numpy as jnp
from jax.experimental import pallas as pl
from jax.experimental.pallas import tpu as pltpu


def autopad(k, p=None, d=1):
    if d > 1:
        k = d * (k - 1) + 1 if isinstance(k, int) else [d * (x - 1) + 1 for x in k]
    if p is None:
        p = k // 2 if isinstance(k, int) else [x // 2 for x in k]
    return p


def _round_up(x, m):
    return (x + m - 1) // m * m


def _pick_tile_h(Ho, Wo, kwc1, c2p, k, budget_bytes):
    """Largest output-row tile whose pipelined VMEM footprint fits the per-generation budget."""
    th = min(64, Ho)
    while th > 8:
        thp = th + (k - 1)
        need = (2 * thp * Wo * kwc1 * 2        # double-buffered bf16 input tile
                + 2 * th * Wo * c2p * 2        # double-buffered bf16 output tile
                + th * Wo * c2p * 4            # f32 accumulator scratch
                + 2 * k * kwc1 * c2p * 2       # resident folded weights (2 bufs)
                + 2 * c2p * 4)                 # resident folded bias
        if need <= budget_bytes:
            break
        th //= 2
    return max(1, min(th, Ho))


def _conv_bn_silu_kernel(x_ref, w_ref, b_ref, o_ref, acc_ref):
    """One (batch x output-row-tile) grid step.

    x_ref  : (1, TH + KH - 1, Wo, KW*C1) bf16  halo-included, KW-folded input row tile
    w_ref  : (KH, KW*C1, C2p)            bf16  conv weights with BN scale folded in (resident)
    b_ref  : (1, C2p)                    f32   folded BN bias (resident)
    o_ref  : (1, TH * Wo, C2p)           bf16  output tile
    acc_ref: (TH * Wo, C2p)              f32   VMEM scratch accumulator (tile-sized)
    """
    KH, KWC1, _ = w_ref.shape
    TH = x_ref.shape[1] - (KH - 1)
    Wo = x_ref.shape[2]

    # KH shifted (TH*Wo, KW*C1) @ (KW*C1, C2p) MXU matmuls; first tap initializes the f32
    # accumulator (no zero-init pass), the remaining taps accumulate.  All slices are along
    # the leading (major) row axis -> no sublane-offset relayout copies.
    acc_ref[...] = jnp.dot(x_ref[0, 0:TH].reshape(TH * Wo, KWC1), w_ref[0],
                           preferred_element_type=jnp.float32)
    for kh in range(1, KH):
        acc_ref[...] += jnp.dot(x_ref[0, kh:kh + TH].reshape(TH * Wo, KWC1), w_ref[kh],
                                preferred_element_type=jnp.float32)

    y = acc_ref[...] + b_ref[...]          # folded BatchNorm (running stats) bias
    y = y * jax.nn.sigmoid(y)              # SiLU (sigmoid on the EUP, overlaps MXU work)
    o_ref[0] = y.astype(o_ref.dtype)       # bf16 writeback


@functools.partial(jax.jit, static_argnames=("k", "s", "p", "eps", "tile_h"))
def conv_bn_silu(x_nchw, w_oihw, gamma, beta, run_mean, run_var,
                 *, k=3, s=1, p=None, eps=1e-5, tile_h=None):
    # TODO(synk): only stride=1 / dilation=1 / groups=1 path implemented (module defaults).
    assert s == 1, "kernel implements stride=1 (module default)"
    pad = autopad(k, p, 1)

    N, C1, H, W = x_nchw.shape
    C2, _, KH, KW = w_oihw.shape
    assert KH == k and KW == k

    # Only pad output channels to a 128 multiple when C2 is already >= 128; for small C2 we
    # keep the true channel count (avoids 16x lane-padded writeback + a post-kernel slice).
    C2p = _round_up(C2, 128) if C2 >= 128 else C2

    # ---- fold BatchNorm (inference / running stats) into conv weights + bias ----
    inv_std = 1.0 / jnp.sqrt(run_var.astype(jnp.float32) + eps)
    scale = gamma.astype(jnp.float32) * inv_std                          # (C2,)
    bias = beta.astype(jnp.float32) - run_mean.astype(jnp.float32) * scale
    w_hwio = jnp.transpose(w_oihw.astype(jnp.float32) * scale[:, None, None, None],
                           (2, 3, 1, 0))                                 # (KH, KW, C1, C2)
    w_folded = w_hwio.reshape(KH, KW * C1, C2)                           # kw-major, c-minor
    if C2p != C2:
        w_folded = jnp.pad(w_folded, ((0, 0), (0, 0), (0, C2p - C2)))
        bias = jnp.pad(bias, (0, C2p - C2))
    w_folded = w_folded.astype(jnp.bfloat16)
    bias_p = bias.reshape(1, C2p)

    # ---- layout glue (bf16 end-to-end): NCHW -> NHWC, spatial zero pad ----
    x_nhwc = jnp.transpose(x_nchw, (0, 2, 3, 1)).astype(jnp.bfloat16)

    Wp = W + 2 * pad
    Wo = Wp - (k - 1)                              # output width  (== W for autopad)
    Ho = H + 2 * pad - (k - 1)                     # output height (== H for autopad)
    KWC1 = KW * C1

    # Per-generation VMEM budget (v7x: 64 MiB physical, v5e/v6e: 128 MiB).
    try:
        vmem_cap = int(pltpu.get_tpu_info().vmem_capacity_bytes)
    except Exception:
        vmem_cap = 64 * 1024 * 1024                # conservative fallback (v7x)
    tile_budget = vmem_cap // 3
    vmem_limit = min(vmem_cap // 2, 64 * 1024 * 1024)

    if tile_h is None:
        TH = _pick_tile_h(Ho, Wo, KWC1, C2p, k, tile_budget)
    else:
        TH = max(1, min(tile_h, Ho))
    n_t = pl.cdiv(Ho, TH)
    THp = TH + (k - 1)                             # input rows per tile (with halo)

    rows_needed = n_t * TH + (k - 1)
    extra = rows_needed - (H + 2 * pad)            # bottom padding so Ho splits into tiles
    x_sp = jnp.pad(x_nhwc, ((0, 0), (pad, pad + extra), (pad, pad), (0, 0)))

    # Fold the KW taps into the channel (contraction) axis with static column slices.
    x_cols = jnp.concatenate([x_sp[:, :, kw:kw + Wo, :] for kw in range(KW)], axis=-1)

    # Row tiles with duplicated halo rows via static slices + stack (no fancy-index gather),
    # flattened into one large parallel grid axis (balanced across v7x's two TensorCores).
    x_tiles = jnp.stack([x_cols[:, t * TH:t * TH + THp] for t in range(n_t)], axis=1)
    x_tiles = x_tiles.reshape(N * n_t, THp, Wo, KWC1)

    out = pl.pallas_call(
        _conv_bn_silu_kernel,
        out_shape=jax.ShapeDtypeStruct((N * n_t, TH * Wo, C2p), jnp.bfloat16),
        grid=(N * n_t,),
        in_specs=[
            pl.BlockSpec((1, THp, Wo, KWC1), lambda g: (g, 0, 0, 0)),
            pl.BlockSpec((KH, KWC1, C2p), lambda g: (0, 0, 0)),     # weights: resident
            pl.BlockSpec((1, C2p), lambda g: (0, 0)),               # bias: resident
        ],
        out_specs=pl.BlockSpec((1, TH * Wo, C2p), lambda g: (g, 0, 0)),
        scratch_shapes=[pltpu.VMEM((TH * Wo, C2p), jnp.float32)],
        compiler_params=pltpu.CompilerParams(
            dimension_semantics=("parallel",),
            vmem_limit_bytes=vmem_limit),
    )(x_tiles, w_folded, bias_p)

    # Post-processing stays in bf16; only the final result is cast back to the input dtype.
    out = out.reshape(N, n_t * TH, Wo, C2p)[:, :Ho, :, :C2]
    return jnp.transpose(out, (0, 3, 1, 2)).astype(x_nchw.dtype)   # back to PyTorch's NCHW


def _reference(x_nchw, w_oihw, gamma, beta, run_mean, run_var, *, k, eps=1e-5):
    pad = autopad(k)
    y = jax.lax.conv_general_dilated(
        x_nchw.astype(jnp.float32), w_oihw.astype(jnp.float32),
        window_strides=(1, 1), padding=[(pad, pad), (pad, pad)],
        dimension_numbers=("NCHW", "OIHW", "NCHW"))
    inv_std = 1.0 / jnp.sqrt(run_var + eps)
    scale = (gamma * inv_std).reshape(1, -1, 1, 1)
    bias = (beta - run_mean * gamma * inv_std).reshape(1, -1, 1, 1)
    y = y * scale + bias
    return y * jax.nn.sigmoid(y)


if __name__ == "__main__":
    # Small shapes consistent with Conv(c1=4, c2=8, k=3)
    N, C1, H, W = 2, 4, 16, 16
    C2, K = 8, 3

    key = jax.random.PRNGKey(0)
    kx, kw = jax.random.split(key)

    x = jax.random.normal(kx, (N, C1, H, W), dtype=jnp.float32)
    # Deterministic parameter init (synthetic, no checkpoint).
    fan_in = C1 * K * K
    w = jax.random.normal(kw, (C2, C1, K, K), dtype=jnp.float32) * (1.0 / fan_in) ** 0.5
    gamma = 1.0 + 0.1 * jnp.arange(C2, dtype=jnp.float32)
    beta = 0.05 * jnp.arange(C2, dtype=jnp.float32)
    run_mean = 0.01 * jnp.arange(C2, dtype=jnp.float32)
    run_var = 1.0 + 0.02 * jnp.arange(C2, dtype=jnp.float32)

    out = conv_bn_silu(x, w, gamma, beta, run_mean, run_var, k=K, s=1)
    out = jax.block_until_ready(out)

    ref = _reference(x, w, gamma, beta, run_mean, run_var, k=K)
    assert out.shape == (N, C2, H, W)
    err = float(jnp.max(jnp.abs(out - ref)))
    # bf16 activations/weights on the MXU with f32 accumulation AND bf16 output writeback
    # -> small rounding diff vs the all-f32 XLA reference.
    assert err < 1e-1, f"mismatch vs XLA reference: {err}"

    print("KERNEL_OK")
</pallas_src>

<mosaic_0001>
module attributes {stable_mosaic.version = 11 : i64} {
  func.func @_conv_bn_silu_kernel(%arg0: i32, %arg1: memref<1x18x16x12xbf16, #tpu.memory_space<vmem>>, %arg2: memref<3x12x8xbf16, #tpu.memory_space<vmem>>, %arg3: memref<1x8xf32, #tpu.memory_space<vmem>>, %arg4: memref<1x256x8xbf16, #tpu.memory_space<vmem>>, %arg5: memref<256x8xf32, #tpu.memory_space<vmem>>) attributes {dimension_semantics = [#tpu.dimension_semantics<parallel>], iteration_bounds = array<i64: 2>, scalar_prefetch = 0 : i64, scratch_operands = 1 : i64, tpu.core_type = #tpu.core_type<tc>, window_params = [{transform_indices = @transform_0, window_bounds = array<i64: 1, 18, 16, 12>}, {pipeline_mode = #tpu.pipeline_mode<synchronous>, transform_indices = @transform_1, window_bounds = array<i64: 3, 12, 8>}, {pipeline_mode = #tpu.pipeline_mode<synchronous>, transform_indices = @transform_2, window_bounds = array<i64: 1, 8>}, {transform_indices = @transform_3, window_bounds = array<i64: 1, 256, 8>}]} {
    %c0 = arith.constant 0 : index
    %c0_0 = arith.constant 0 : index
    %c0_1 = arith.constant 0 : index
    %c0_2 = arith.constant 0 : index
    %0 = vector.load %arg1[%c0, %c0_0, %c0_1, %c0_2] : memref<1x18x16x12xbf16, #tpu.memory_space<vmem>>, vector<1x16x16x12xbf16>
    %1 = vector.shape_cast %0 : vector<1x16x16x12xbf16> to vector<16x16x12xbf16>
    %2 = vector.shape_cast %1 : vector<16x16x12xbf16> to vector<256x12xbf16>
    %c0_3 = arith.constant 0 : index
    %c0_4 = arith.constant 0 : index
    %c0_5 = arith.constant 0 : index
    %3 = vector.load %arg2[%c0_3, %c0_4, %c0_5] : memref<3x12x8xbf16, #tpu.memory_space<vmem>>, vector<1x12x8xbf16>
    %4 = vector.shape_cast %3 : vector<1x12x8xbf16> to vector<12x8xbf16>
    %cst = arith.constant dense<0.000000e+00> : vector<256x8xf32>
    %5 = tpu.matmul %2, %4, %cst {dimension_numbers = #tpu.dot_dimension_numbers<[1], [0], [0], [1], [0, 0, 1, 1], [], []>} : vector<256x12xbf16>, vector<12x8xbf16>, vector<256x8xf32> -> vector<256x8xf32>
    %c0_6 = arith.constant 0 : index
    %c0_7 = arith.constant 0 : index
    %6 = vector.load %arg5[%c0_6, %c0_7] : memref<256x8xf32, #tpu.memory_space<vmem>>, vector<256x8xf32>
    tpu.vector_store %arg5[%c0_6, %c0_7], %5 {strides = array<i32>} : memref<256x8xf32, #tpu.memory_space<vmem>>, vector<256x8xf32>,
    %c0_8 = arith.constant 0 : index
    %c0_9 = arith.constant 0 : index
    %7 = vector.load %arg5[%c0_8, %c0_9] : memref<256x8xf32, #tpu.memory_space<vmem>>, vector<256x8xf32>
    %c0_10 = arith.constant 0 : index
    %c1 = arith.constant 1 : index
    %c0_11 = arith.constant 0 : index
    %c0_12 = arith.constant 0 : index
    %8 = vector.load %arg1[%c0_10, %c1, %c0_11, %c0_12] : memref<1x18x16x12xbf16, #tpu.memory_space<vmem>>, vector<1x16x16x12xbf16>
    %9 = vector.shape_cast %8 : vector<1x16x16x12xbf16> to vector<16x16x12xbf16>
    %10 = vector.shape_cast %9 : vector<16x16x12xbf16> to vector<256x12xbf16>
    %c1_13 = arith.constant 1 : index
    %c0_14 = arith.constant 0 : index
    %c0_15 = arith.constant 0 : index
    %11 = vector.load %arg2[%c1_13, %c0_14, %c0_15] : memref<3x12x8xbf16, #tpu.memory_space<vmem>>, vector<1x12x8xbf16>
    %12 = vector.shape_cast %11 : vector<1x12x8xbf16> to vector<12x8xbf16>
    %cst_16 = arith.constant dense<0.000000e+00> : vector<256x8xf32>
    %13 = tpu.matmul %10, %12, %cst_16 {dimension_numbers = #tpu.dot_dimension_numbers<[1], [0], [0], [1], [0, 0, 1, 1], [], []>} : vector<256x12xbf16>, vector<12x8xbf16>, vector<256x8xf32> -> vector<256x8xf32>
    %14 = arith.addf %7, %13 : vector<256x8xf32>
    %c0_17 = arith.constant 0 : index
    %c0_18 = arith.constant 0 : index
    %15 = vector.load %arg5[%c0_17, %c0_18] : memref<256x8xf32, #tpu.memory_space<vmem>>, vector<256x8xf32>
    tpu.vector_store %arg5[%c0_17, %c0_18], %14 {strides = array<i32>} : memref<256x8xf32, #tpu.memory_space<vmem>>, vector<256x8xf32>,
    %c0_19 = arith.constant 0 : index
    %c0_20 = arith.constant 0 : index
    %16 = vector.load %arg5[%c0_19, %c0_20] : memref<256x8xf32, #tpu.memory_space<vmem>>, vector<256x8xf32>
    %c0_21 = arith.constant 0 : index
    %c2 = arith.constant 2 : index
    %c0_22 = arith.constant 0 : index
    %c0_23 = arith.constant 0 : index
    %17 = vector.load %arg1[%c0_21, %c2, %c0_22, %c0_23] : memref<1x18x16x12xbf16, #tpu.memory_space<vmem>>, vector<1x16x16x12xbf16>
    %18 = vector.shape_cast %17 : vector<1x16x16x12xbf16> to vector<16x16x12xbf16>
    %19 = vector.shape_cast %18 : vector<16x16x12xbf16> to vector<256x12xbf16>
    %c2_24 = arith.constant 2 : index
    %c0_25 = arith.constant 0 : index
    %c0_26 = arith.constant 0 : index
    %20 = vector.load %arg2[%c2_24, %c0_25, %c0_26] : memref<3x12x8xbf16, #tpu.memory_space<vmem>>, vector<1x12x8xbf16>
    %21 = vector.shape_cast %20 : vector<1x12x8xbf16> to vector<12x8xbf16>
    %cst_27 = arith.constant dense<0.000000e+00> : vector<256x8xf32>
    %22 = tpu.matmul %19, %21, %cst_27 {dimension_numbers = #tpu.dot_dimension_numbers<[1], [0], [0], [1], [0, 0, 1, 1], [], []>} : vector<256x12xbf16>, vector<12x8xbf16>, vector<256x8xf32> -> vector<256x8xf32>
    %23 = arith.addf %16, %22 : vector<256x8xf32>
    %c0_28 = arith.constant 0 : index
    %c0_29 = arith.constant 0 : index
    %24 = vector.load %arg5[%c0_28, %c0_29] : memref<256x8xf32, #tpu.memory_space<vmem>>, vector<256x8xf32>
    tpu.vector_store %arg5[%c0_28, %c0_29], %23 {strides = array<i32>} : memref<256x8xf32, #tpu.memory_space<vmem>>, vector<256x8xf32>,
    %c0_30 = arith.constant 0 : index
    %c0_31 = arith.constant 0 : index
    %25 = vector.load %arg5[%c0_30, %c0_31] : memref<256x8xf32, #tpu.memory_space<vmem>>, vector<256x8xf32>
    %c0_32 = arith.constant 0 : index
    %c0_33 = arith.constant 0 : index
    %26 = vector.load %arg3[%c0_32, %c0_33] : memref<1x8xf32, #tpu.memory_space<vmem>>, vector<1x8xf32>
    %27 = vector.broadcast %26 : vector<1x8xf32> to vector<256x8xf32>
    %28 = arith.addf %25, %27 : vector<256x8xf32>
    %29 = arith.negf %28 : vector<256x8xf32>
    %30 = math.exp %29 : vector<256x8xf32>
    %cst_34 = arith.constant 1.000000e+00 : f32
    %31 = vector.broadcast %cst_34 : f32 to vector<256x8xf32>
    %32 = arith.addf %31, %30 : vector<256x8xf32>
    %33 = arith.divf %31, %32 : vector<256x8xf32>
    %34 = arith.mulf %28, %33 : vector<256x8xf32>
    %35 = arith.truncf %34 : vector<256x8xf32> to vector<256x8xbf16>
    %c0_35 = arith.constant 0 : index
    %c0_36 = arith.constant 0 : index
    %c0_37 = arith.constant 0 : index
    %36 = vector.load %arg4[%c0_35, %c0_36, %c0_37] : memref<1x256x8xbf16, #tpu.memory_space<vmem>>, vector<1x256x8xbf16>
    %37 = vector.shape_cast %36 : vector<1x256x8xbf16> to vector<256x8xbf16>
    %38 = vector.shape_cast %35 : vector<256x8xbf16> to vector<1x256x8xbf16>
    tpu.vector_store %arg4[%c0_35, %c0_36, %c0_37], %38 {strides = array<i32>} : memref<1x256x8xbf16, #tpu.memory_space<vmem>>, vector<1x256x8xbf16>,
    return
  }
  func.func @transform_0(%arg0: i32) -> (i32, i32, i32, i32) {
    %c0_i32 = arith.constant 0 : i32
    %c0_i32_0 = arith.constant 0 : i32
    %c0_i32_1 = arith.constant 0 : i32
    %c0_i32_2 = arith.constant 0 : i32
    return %arg0, %c0_i32, %c0_i32_0, %c0_i32_1 : i32, i32, i32, i32
  }
  func.func @transform_1(%arg0: i32) -> (i32, i32, i32) {
    %c0_i32 = arith.constant 0 : i32
    %c0_i32_0 = arith.constant 0 : i32
    %c0_i32_1 = arith.constant 0 : i32
    %c0_i32_2 = arith.constant 0 : i32
    return %c0_i32, %c0_i32_0, %c0_i32_1 : i32, i32, i32
  }
  func.func @transform_2(%arg0: i32) -> (i32, i32) {
    %c0_i32 = arith.constant 0 : i32
    %c0_i32_0 = arith.constant 0 : i32
    %c0_i32_1 = arith.constant 0 : i32
    return %c0_i32, %c0_i32_0 : i32, i32
  }
  func.func @transform_3(%arg0: i32) -> (i32, i32, i32) {
    %c0_i32 = arith.constant 0 : i32
    %c0_i32_0 = arith.constant 0 : i32
    %c0_i32_1 = arith.constant 0 : i32
    return %arg0, %c0_i32, %c0_i32_0 : i32, i32, i32
  }
}

</mosaic_0001>

<bundles_post_ra>
// kernel: conv_bn_silu.1
= control target key start
LH: loop header
LB: loop body
LE: loop exit
PB: predicated region body
PF: predicated region fallthrough
CT: control target
= control target key end

     0   :  { %s2557_s12 = smov 0   ;;  %s3067_s0 = inlined_call_operand.vmem [shape: bf16[2,18,16,12], index: 0, kind: input, shape index: {}]   ;;  %s3068_s1 = inlined_call_operand.vmem [shape: bf16[3,12,8], index: 1, kind: input, shape index: {}]   ;;  %s3069_s2 = inlined_call_operand.vmem [shape: f32[1,8], index: 2, kind: input, shape index: {}]   ;;  %s3070_s3 = inlined_call_operand.vmem [shape: bf16[2,256,8], index: 3, kind: output, shape index: {}]  }
   0x1 LB: > { %s1907_s13 = sadd.s32 4294967295, %s2535_s12   ;;  %p1911_p0 = scmp.ge.s32.totalorder %s2535_s12, 1  ;;  %s2535_s12 = sphi %s2557_s12, %s13_s12  }
   0x2   : > { %p137_p1 = scmp.lt.s32.totalorder %s2535_s12, 3 }
   0x4   : > { %p138_p2 = pnand %p1911_p0, %p137_p1 }
   0x5   : > { %v2350_v0 = vld [vmem:[%s3068_s1] sm:$0x3f] (!%p138_p2)   ;;  %vm340_vm0 = vcmask (!%p138_p2), 1045504   ;;  %p161_p3 = scmp.lt.s32.totalorder (!%p138_p2), %s1907_s13, 1  ;;  %v2352_v2 = vld [vmem:[%s3068_s1 + $0x8] sm:$0x3f] (!%p138_p2)  }
   0x6   : > { %141 = sbr.rel (%p138_p2) target bundleno = 386 (0x182), region = 32  ;;  %2338 = vmatprep.subr.msk.bf16.mxu1 (!%p138_p2), %vm340_vm0, %v2350_v0  ;;  %v342_v1 = vsel (!%p138_p2), %vm340_vm0, %v2350_v0, 0  ;;  %2337 = vmatprep.subr.msk.bf16.mxu0 (!%p138_p2), %vm340_vm0, %v2350_v0  ;;  %v2358_v3 = vld [vmem:[%s3068_s1 + $0x10] sm:$0x3f] (!%p138_p2)   ;;  %vm291_vm1 = vcmask (!%p138_p2), 97280   ;;  %v740_v6 = vsel (!%p138_p2), %vm340_vm0, %v2352_v2, 0 }
   0x7   : > { %2336 = vmatpush3.bf16.msra.mxu1 (!%p138_p2), %v342_v1  ;;  %2234 = vmatpush3.bf16.msra.mxu0 (!%p138_p2), %v342_v1  ;;  %v1169_v9 = vsel (!%p138_p2), %vm340_vm0, %v2358_v3, 0  ;;  %vm505_vm2 = vcmask (!%p138_p2), 64512   ;;  %vm1819_vm3 = vcmask (!%p138_p2), 60416  }
   0x8   : > { %2339 = vmatprep.subr.msk.bf16.mxu1 (!%p138_p2), %vm340_vm0, %v2352_v2  ;;  %2340 = vmatprep.subr.msk.bf16.mxu0 (!%p138_p2), %vm340_vm0, %v2358_v3 }
   0xd   : > { %s3072_s13 = smov (!%p161_p3, %s1907_s13), 1 }
   0xe   : > { %s2341_s20 = smul.u32 144, %s3072_s13  ;;  %s2149_s26 = sshll.u32 %s3072_s13, 7 }
   0xf   : > { %s2851_s29 = scalar_lea.vmem %s3070_s3, %s2149_s26 }
  0x10   : > { %s2585_s23 = scalar_lea.vmem %s3067_s0, %s2341_s20 }
  0x11   : > { %v2351_v4 = vld [vmem:[%s2585_s23 + $0x40] sm:$0xff]   ;;  %v2353_v5 = vld [vmem:[%s2585_s23 + $0x48] sm:$0xff]   ;;  %v2356_v10 = vld [vmem:[%s2585_s23 + $0x50] sm:$0xff]  }
  0x12   : > { %2251 = vmatprep.mubr.msk.bf16.mxu1 %vm291_vm1, %v2351_v4  ;;  %v2354_v7 = vld [vmem:[%s2585_s23] sm:$0xff]   ;;  %v2355_v8 = vld [vmem:[%s2585_s23 + $0x8] sm:$0xff]   ;;  %v2359_v11 = vld [vmem:[%s2585_s23 + $0x10] sm:$0xff]  }
  0x13   : > { %2252 = vmatmul.mubr.msk.bf16.vlgmr.msra.gmra.mrb[0].mxu1 %vm291_vm1, %v2353_v5  ;;  %2235 = vmatprep.mubr.msk.bf16.mxu0 %vm291_vm1, %v2354_v7  ;;  %v2357_v12 = vld [vmem:[%s2585_s23 + $0x58] sm:$0xff]   ;;  %v2361_v13 = vld [vmem:[%s2585_s23 + $0x60] sm:$0xff]   ;;  %v2362_v16 = vld [vmem:[%s2585_s23 + $0x68] sm:$0xff]  }
  0x14   : > { %2268 = vmatpush3.bf16.msra.mxu1 %v740_v6  ;;  %2236 = vmatmul.mubr.msk.bf16.vlgmr.msra.gmra.mrb[0].mxu0 %vm291_vm1, %v2355_v8  ;;  %v2360_v14 = vld [vmem:[%s2585_s23 + $0x18] sm:$0xff]   ;;  %v2363_v15 = vld [vmem:[%s2585_s23 + $0x20] sm:$0xff]   ;;  %v2365_v17 = vld [vmem:[%s2585_s23 + $0x70] sm:$0xff]  }
  0x15   : > { %2255 = vmatprep.mubr.msk.bf16.mxu1 %vm291_vm1, %v2356_v10  ;;  %2302 = vmatpush3.bf16.msra.mxu0 %v1169_v9  ;;  %v2364_v18 = vld [vmem:[%s2585_s23 + $0x28] sm:$0xff]   ;;  %v2367_v19 = vld [vmem:[%s2585_s23 + $0x30] sm:$0xff]   ;;  %v2366_v20 = vld [vmem:[%s2585_s23 + $0x78] sm:$0xff]  }
  0x16   : > { %2239 = vmatprep.mubr.msk.bf16.mxu0 %vm291_vm1, %v2359_v11  ;;  %v2369_v21 = vld [vmem:[%s2585_s23 + $0x8] sm:$0xff]   ;;  %v2368_v22 = vld [vmem:[%s2585_s23 + $0x38] sm:$0xff]   ;;  %v2371_v23 = vld [vmem:[%s2585_s23 + $0x10] sm:$0xff]  }
  0x17   : > { %v2370_v24 = vld [vmem:[%s2585_s23 + $0x10] sm:$0xff]   ;;  %v2372_v25 = vld [vmem:[%s2585_s23 + $0x18] sm:$0xff]   ;;  %v2375_v27 = vld [vmem:[%s2585_s23 + $0x20] sm:$0xff]  }
  0x18   : > { %v2373_v26 = vld [vmem:[%s2585_s23 + $0x18] sm:$0xff]   ;;  %v2374_v28 = vld [vmem:[%s2585_s23 + $0x20] sm:$0xff]   ;;  %v2376_v29 = vld [vmem:[%s2585_s23 + $0x28] sm:$0xff]  }
  0x19   : > { %v2377_v30 = vld [vmem:[%s2585_s23 + $0x28] sm:$0xff]   ;;  %v2379_v31 = vld [vmem:[%s2585_s23 + $0x30] sm:$0xff]   ;;  %v2380_v33 = vld [vmem:[%s2585_s23 + $0x38] sm:$0xff]  }
  0x1a   : > { %v2378_v32 = vld [vmem:[%s2585_s23 + $0x30] sm:$0xff]   ;;  %v2381_v34 = vld [vmem:[%s2585_s23 + $0x38] sm:$0xff]   ;;  %v2383_v35 = vld [vmem:[%s2585_s23 + $0x40] sm:$0xff]  }
  0x1b   : > { %2256 = vmatmul.mubr.msk.bf16.gmra.mrb[4].mxu1 %vm291_vm1, %v2357_v12  ;;  %v2382_v36 = vld [vmem:[%s2585_s23 + $0x40] sm:$0xff]   ;;  %v2384_v37 = vld [vmem:[%s2585_s23 + $0x48] sm:$0xff]   ;;  %v2387_v39 = vld [vmem:[%s2585_s23 + $0x50] sm:$0xff]  }
  0x1c   : > { %2259 = vmatprep.mubr.msk.bf16.mxu1 %vm291_vm1, %v2361_v13  ;;  %2240 = vmatmul.mubr.msk.bf16.gmra.mrb[4].mxu0 %vm291_vm1, %v2360_v14  ;;  %v2385_v38 = vld [vmem:[%s2585_s23 + $0x48] sm:$0xff]   ;;  %v2386_v40 = vld [vmem:[%s2585_s23 + $0x50] sm:$0xff]   ;;  %v2388_v41 = vld [vmem:[%s2585_s23 + $0x58] sm:$0xff]  }
  0x1d   : > { %2243 = vmatprep.mubr.msk.bf16.mxu0 %vm291_vm1, %v2363_v15  ;;  %v2389_v42 = vld [vmem:[%s2585_s23 + $0x58] sm:$0xff]   ;;  %v2391_v43 = vld [vmem:[%s2585_s23 + $0x60] sm:$0xff]   ;;  %v2392_v45 = vld [vmem:[%s2585_s23 + $0x68] sm:$0xff]  }
  0x1e   : > { %v2390_v44 = vld [vmem:[%s2585_s23 + $0x60] sm:$0xff]   ;;  %v2393_v46 = vld [vmem:[%s2585_s23 + $0x68] sm:$0xff]   ;;  %v2395_v47 = vld [vmem:[%s2585_s23 + $0x70] sm:$0xff]  }
  0x1f   : > { %v2394_v48 = vld [vmem:[%s2585_s23 + $0x70] sm:$0xff]   ;;  %v2396_v49 = vld [vmem:[%s2585_s23 + $0x78] sm:$0xff]   ;;  %v2399_v51 = vld [vmem:[%s2585_s23 + $0x80] sm:$0xff]  }
  0x20   : > { %v2397_v50 = vld [vmem:[%s2585_s23 + $0x78] sm:$0xff]   ;;  %v2398_v52 = vld [vmem:[%s2585_s23 + $0x80] sm:$0xff]   ;;  %v2400_v53 = vld [vmem:[%s2585_s23 + $0x88] sm:$0xff]  }
  0x23   : > { %2260 = vmatmul.mubr.msk.bf16.gmra.mrb[8].mxu1 %vm291_vm1, %v2362_v16 }
  0x24   : > { %2263 = vmatprep.mubr.msk.bf16.mxu1 %vm291_vm1, %v2365_v17  ;;  %2244 = vmatmul.mubr.msk.bf16.gmra.mrb[8].mxu0 %vm291_vm1, %v2364_v18 }
  0x25   : > { %2247 = vmatprep.mubr.msk.bf16.mxu0 %vm291_vm1, %v2367_v19 }
  0x2b   : > { %2264 = vmatmul.mubr.msk.bf16.gmra.mrb[12].mxu1 %vm291_vm1, %v2366_v20 }
  0x2c   : > { %2269 = vmatprep.mubr.msk.bf16.mxu1 %vm291_vm1, %v2369_v21  ;;  %2248 = vmatmul.mubr.msk.bf16.gmra.mrb[12].mxu0 %vm291_vm1, %v2368_v22 }
  0x2d   : > { %2303 = vmatprep.mubr.msk.bf16.mxu0 %vm291_vm1, %v2371_v23 }
  0x33   : > { %2270 = vmatmul.mubr.msk.bf16.vlgmr.msra.gmra.mrb[16].mxu1 %vm291_vm1, %v2370_v24 }
  0x34   : > { %2273 = vmatprep.mubr.msk.bf16.mxu1 %vm291_vm1, %v2372_v25  ;;  %2304 = vmatmul.mubr.msk.bf16.vlgmr.msra.gmra.mrb[16].mxu0 %vm291_vm1, %v2373_v26 }
  0x35   : > { %2307 = vmatprep.mubr.msk.bf16.mxu0 %vm291_vm1, %v2375_v27 }
  0x3b   : > { %2274 = vmatmul.mubr.msk.bf16.gmra.mrb[20].mxu1 %vm291_vm1, %v2374_v28 }
  0x3c   : > { %2277 = vmatprep.mubr.msk.bf16.mxu1 %vm291_vm1, %v2376_v29  ;;  %2308 = vmatmul.mubr.msk.bf16.gmra.mrb[20].mxu0 %vm291_vm1, %v2377_v30 }
  0x3d   : > { %2311 = vmatprep.mubr.msk.bf16.mxu0 %vm291_vm1, %v2379_v31 }
  0x43   : > { %2278 = vmatmul.mubr.msk.bf16.gmra.mrb[24].mxu1 %vm291_vm1, %v2378_v32 }
  0x44   : > { %2281 = vmatprep.mubr.msk.bf16.mxu1 %vm291_vm1, %v2380_v33  ;;  %2312 = vmatmul.mubr.msk.bf16.gmra.mrb[24].mxu0 %vm291_vm1, %v2381_v34 }
  0x45   : > { %2315 = vmatprep.mubr.msk.bf16.mxu0 %vm291_vm1, %v2383_v35 }
  0x4b   : > { %2282 = vmatmul.mubr.msk.bf16.gmra.mrb[28].mxu1 %vm291_vm1, %v2382_v36 }
  0x4c   : > { %2285 = vmatprep.mubr.msk.bf16.mxu1 %vm291_vm1, %v2384_v37  ;;  %2316 = vmatmul.mubr.msk.bf16.gmra.mrb[28].mxu0 %vm291_vm1, %v2385_v38 }
  0x4d   : > { %2319 = vmatprep.mubr.msk.bf16.mxu0 %vm291_vm1, %v2387_v39 }
  0x53   : > { %2286 = vmatmul.mubr.msk.bf16.gmra.mrb[32].mxu1 %vm291_vm1, %v2386_v40 }
  0x54   : > { %2289 = vmatprep.mubr.msk.bf16.mxu1 %vm291_vm1, %v2388_v41  ;;  %2320 = vmatmul.mubr.msk.bf16.gmra.mrb[32].mxu0 %vm291_vm1, %v2389_v42 }
  0x55   : > { %2323 = vmatprep.mubr.msk.bf16.mxu0 %vm291_vm1, %v2391_v43 }
  0x5b   : > { %2290 = vmatmul.mubr.msk.bf16.gmra.mrb[36].mxu1 %vm291_vm1, %v2390_v44 }
  0x5c   : > { %2293 = vmatprep.mubr.msk.bf16.mxu1 %vm291_vm1, %v2392_v45  ;;  %2324 = vmatmul.mubr.msk.bf16.gmra.mrb[36].mxu0 %vm291_vm1, %v2393_v46 }
  0x5d   : > { %2327 = vmatprep.mubr.msk.bf16.mxu0 %vm291_vm1, %v2395_v47 }
  0x63   : > { %2294 = vmatmul.mubr.msk.bf16.gmra.mrb[40].mxu1 %vm291_vm1, %v2394_v48 }
  0x64   : > { %2297 = vmatprep.mubr.msk.bf16.mxu1 %vm291_vm1, %v2396_v49  ;;  %2328 = vmatmul.mubr.msk.bf16.gmra.mrb[40].mxu0 %vm291_vm1, %v2397_v50 }
  0x65   : > { %2331 = vmatprep.mubr.msk.bf16.mxu0 %vm291_vm1, %v2399_v51 }
  0x6b   : > { %2298 = vmatmul.mubr.msk.bf16.gmra.mrb[44].mxu1 %vm291_vm1, %v2398_v52 }
  0x6c   : > { %2332 = vmatmul.mubr.msk.bf16.gmra.mrb[44].mxu0 %vm291_vm1, %v2400_v53 }
  0xe6   : > { %v2253_v54 = vpop.f32.mrb[0].mxu1 }
  0xe7   : > { %524 = vst.msk [vmem:[#allocation2 + $0x90] sm:$0xff] %vm505_vm2, %v2253_v54  ;;  %v442_v55 = vpop.f32.mrb[1].mxu1  ;;  %v2237_v57 = vpop.f32.mrb[0].mxu0 }
  0xe8   : > { %522 = vst.msk [vmem:[#allocation2 + $0x80] sm:$0xff] %vm505_vm2, %v442_v55  ;;  %v2254_v56 = vpop.f32.mrb[2].mxu1  ;;  %508 = vst.msk [vmem:[#allocation2 + $0x10] sm:$0xff] %vm505_vm2, %v2237_v57  ;;  %v378_v59 = vpop.f32.mrb[1].mxu0 }
  0xe9   : > { %525 = vst.msk [vmem:[#allocation2 + $0x98] sm:$0xff] %vm505_vm2, %v2254_v56  ;;  %v445_v58 = vpop.f32.mrb[3].mxu1  ;;  %506 = vst.msk [vmem:[#allocation2] sm:$0xff] %vm505_vm2, %v378_v59  ;;  %v2238_v60 = vpop.f32.mrb[2].mxu0 }
  0xea   : > { %523 = vst.msk [vmem:[#allocation2 + $0x88] sm:$0xff] %vm505_vm2, %v445_v58  ;;  %509 = vst.msk [vmem:[#allocation2 + $0x18] sm:$0xff] %vm505_vm2, %v2238_v60  ;;  %v381_v61 = vpop.f32.mrb[3].mxu0 }
  0xeb   : > { %507 = vst.msk [vmem:[#allocation2 + $0x8] sm:$0xff] %vm505_vm2, %v381_v61 }
  0xee   : > { %v2257_v62 = vpop.f32.mrb[4].mxu1 }
  0xef   : > { %528 = vst.msk [vmem:[#allocation2 + $0xb0] sm:$0xff] %vm505_vm2, %v2257_v62  ;;  %v458_v63 = vpop.f32.mrb[5].mxu1  ;;  %v2241_v1 = vpop.f32.mrb[4].mxu0  ;;  %v540_v22 = vld [vmem:[#allocation2 + $0x10] sm:$0xff] }
  0xf0   : > { %526 = vst.msk [vmem:[#allocation2 + $0xa0] sm:$0xff] %vm505_vm2, %v458_v63  ;;  %v2258_v0 = vpop.f32.mrb[6].mxu1  ;;  %512 = vst.msk [vmem:[#allocation2 + $0x30] sm:$0xff] %vm505_vm2, %v2241_v1  ;;  %v394_v3 = vpop.f32.mrb[5].mxu0  ;;  %v538_v25 = vld [vmem:[#allocation2] sm:$0xff] }
  0xf1   : > { %529 = vst.msk [vmem:[#allocation2 + $0xb8] sm:$0xff] %vm505_vm2, %v2258_v0  ;;  %v461_v2 = vpop.f32.mrb[7].mxu1  ;;  %510 = vst.msk [vmem:[#allocation2 + $0x20] sm:$0xff] %vm505_vm2, %v394_v3  ;;  %v2242_v4 = vpop.f32.mrb[6].mxu0  ;;  %v541_v28 = vld [vmem:[#allocation2 + $0x18] sm:$0xff] }
  0xf2   : > { %527 = vst.msk [vmem:[#allocation2 + $0xa8] sm:$0xff] %vm505_vm2, %v461_v2  ;;  %513 = vst.msk [vmem:[#allocation2 + $0x38] sm:$0xff] %vm505_vm2, %v2242_v4  ;;  %v397_v5 = vpop.f32.mrb[7].mxu0  ;;  %v539_v32 = vld [vmem:[#allocation2 + $0x8] sm:$0xff]  ;;  %v2732_v3 = vld [vmem:[%s3069_s2] ss:$0 sm:$0xff] }
  0xf3   : > { %511 = vst.msk [vmem:[#allocation2 + $0x28] sm:$0xff] %vm505_vm2, %v397_v5 }
  0xf6   : > { %v2261_v6 = vpop.f32.mrb[8].mxu1 }
  0xf7   : > { %532 = vst.msk [vmem:[#allocation2 + $0xd0] sm:$0xff] %vm505_vm2, %v2261_v6  ;;  %v474_v7 = vpop.f32.mrb[9].mxu1  ;;  %v2245_v9 = vpop.f32.mrb[8].mxu0  ;;  %v544_v38 = vld [vmem:[#allocation2 + $0x30] sm:$0xff] }
  0xf8   : > { %530 = vst.msk [vmem:[#allocation2 + $0xc0] sm:$0xff] %vm505_vm2, %v474_v7  ;;  %v2262_v8 = vpop.f32.mrb[10].mxu1  ;;  %516 = vst.msk [vmem:[#allocation2 + $0x50] sm:$0xff] %vm505_vm2, %v2245_v9  ;;  %v410_v11 = vpop.f32.mrb[9].mxu0  ;;  %v542_v41 = vld [vmem:[#allocation2 + $0x20] sm:$0xff] }
  0xf9   : > { %533 = vst.msk [vmem:[#allocation2 + $0xd8] sm:$0xff] %vm505_vm2, %v2262_v8  ;;  %v477_v10 = vpop.f32.mrb[11].mxu1  ;;  %514 = vst.msk [vmem:[#allocation2 + $0x40] sm:$0xff] %vm505_vm2, %v410_v11  ;;  %v2246_v12 = vpop.f32.mrb[10].mxu0  ;;  %v545_v45 = vld [vmem:[#allocation2 + $0x38] sm:$0xff] }
  0xfa   : > { %531 = vst.msk [vmem:[#allocation2 + $0xc8] sm:$0xff] %vm505_vm2, %v477_v10  ;;  %517 = vst.msk [vmem:[#allocation2 + $0x58] sm:$0xff] %vm505_vm2, %v2246_v12  ;;  %v413_v13 = vpop.f32.mrb[11].mxu0  ;;  %v543_v51 = vld [vmem:[#allocation2 + $0x28] sm:$0xff] }
  0xfb   : > { %515 = vst.msk [vmem:[#allocation2 + $0x48] sm:$0xff] %vm505_vm2, %v413_v13 }
  0xfe   : > { %v2265_v14 = vpop.f32.mrb[12].mxu1 }
  0xff   : > { %536 = vst.msk [vmem:[#allocation2 + $0xf0] sm:$0xff] %vm505_vm2, %v2265_v14  ;;  %v490_v15 = vpop.f32.mrb[13].mxu1  ;;  %v2249_v17 = vpop.f32.mrb[12].mxu0  ;;  %v548_v62 = vld [vmem:[#allocation2 + $0x50] sm:$0xff] }
 0x100   : > { %534 = vst.msk [vmem:[#allocation2 + $0xe0] sm:$0xff] %vm505_vm2, %v490_v15  ;;  %v2266_v16 = vpop.f32.mrb[14].mxu1  ;;  %520 = vst.msk [vmem:[#allocation2 + $0x70] sm:$0xff] %vm505_vm2, %v2249_v17  ;;  %v426_v19 = vpop.f32.mrb[13].mxu0  ;;  %v546_v1 = vld [vmem:[#allocation2 + $0x40] sm:$0xff] }
 0x101   : > { %537 = vst.msk [vmem:[#allocation2 + $0xf8] sm:$0xff] %vm505_vm2, %v2266_v16  ;;  %v493_v18 = vpop.f32.mrb[15].mxu1  ;;  %518 = vst.msk [vmem:[#allocation2 + $0x60] sm:$0xff] %vm505_vm2, %v426_v19  ;;  %v2250_v20 = vpop.f32.mrb[14].mxu0  ;;  %v549_v6 = vld [vmem:[#allocation2 + $0x58] sm:$0xff] }
 0x102   : > { %535 = vst.msk [vmem:[#allocation2 + $0xe8] sm:$0xff] %vm505_vm2, %v493_v18  ;;  %521 = vst.msk [vmem:[#allocation2 + $0x78] sm:$0xff] %vm505_vm2, %v2250_v20  ;;  %v429_v21 = vpop.f32.mrb[15].mxu0  ;;  %v547_v12 = vld [vmem:[#allocation2 + $0x48] sm:$0xff] }
 0x103   : > { %519 = vst.msk [vmem:[#allocation2 + $0x68] sm:$0xff] %vm505_vm2, %v429_v21 }
 0x106   : > { %v2271_v23 = vpop.f32.mrb[16].mxu1 }
 0x107   : > { %v905_v24 = vadd.f32 %v2271_v23, %v540_v22  ;;  %v776_v26 = vpop.f32.mrb[17].mxu1  ;;  %v2305_v30 = vpop.f32.mrb[16].mxu0 }
 0x108   : > { %v903_v27 = vadd.f32 %v776_v26, %v538_v25  ;;  %v2272_v29 = vpop.f32.mrb[18].mxu1  ;;  %v1205_v34 = vpop.f32.mrb[17].mxu0 }
 0x109   : > { %937 = vst.msk [vmem:[#allocation2 + $0x10] sm:$0xff] %vm505_vm2, %v905_v24  ;;  %v906_v31 = vadd.f32 %v2272_v29, %v541_v28  ;;  %v779_v33 = vpop.f32.mrb[19].mxu1  ;;  %v2306_v36 = vpop.f32.mrb[18].mxu0 }
 0x10a   : > { %935 = vst.msk [vmem:[#allocation2] sm:$0xff] %vm505_vm2, %v903_v27  ;;  %v904_v35 = vadd.f32 %v779_v33, %v539_v32  ;;  %v1208_v37 = vpop.f32.mrb[19].mxu0  ;;  %v552_v33 = vld [vmem:[#allocation2 + $0x70] sm:$0xff] }
 0x10b   : > { %938 = vst.msk [vmem:[#allocation2 + $0x18] sm:$0xff] %vm505_vm2, %v906_v31 }
 0x10c   : > { %936 = vst.msk [vmem:[#allocation2 + $0x8] sm:$0xff] %vm505_vm2, %v904_v35 }
 0x10e   : > { %v2275_v39 = vpop.f32.mrb[20].mxu1 }
 0x10f   : > { %v909_v40 = vadd.f32 %v2275_v39, %v544_v38  ;;  %v792_v42 = vpop.f32.mrb[21].mxu1  ;;  %v2309_v47 = vpop.f32.mrb[20].mxu0 }
 0x110   : > { %v969_v43 = vld [vmem:[#allocation2 + $0x10] sm:$0xff]  ;;  %v907_v44 = vadd.f32 %v792_v42, %v542_v41  ;;  %v2276_v46 = vpop.f32.mrb[22].mxu1  ;;  %v1221_v53 = vpop.f32.mrb[21].mxu0  ;;  %v553_v42 = vld [vmem:[#allocation2 + $0x78] sm:$0xff] }
 0x111   : > { %v1334_v48 = vadd.f32 %v2305_v30, %v969_v43  ;;  %941 = vst.msk [vmem:[#allocation2 + $0x30] sm:$0xff] %vm505_vm2, %v909_v40  ;;  %v967_v49 = vld [vmem:[#allocation2] sm:$0xff]  ;;  %v910_v50 = vadd.f32 %v2276_v46, %v545_v45  ;;  %v795_v52 = vpop.f32.mrb[23].mxu1  ;;  %v2310_v57 = vpop.f32.mrb[22].mxu0 }
 0x112   : > { %v1332_v54 = vadd.f32 %v1205_v34, %v967_v49  ;;  %939 = vst.msk [vmem:[#allocation2 + $0x20] sm:$0xff] %vm505_vm2, %v907_v44  ;;  %v970_v55 = vld [vmem:[#allocation2 + $0x18] sm:$0xff]  ;;  %v908_v56 = vadd.f32 %v795_v52, %v543_v51  ;;  %v1224_v60 = vpop.f32.mrb[23].mxu0 }
 0x113   : > { %1366 = vst.msk [vmem:[#allocation2 + $0x10] sm:$0xff] %vm505_vm2, %v1334_v48  ;;  %v1335_v58 = vadd.f32 %v2306_v36, %v970_v55  ;;  %942 = vst.msk [vmem:[#allocation2 + $0x38] sm:$0xff] %vm505_vm2, %v910_v50  ;;  %v968_v59 = vld [vmem:[#allocation2 + $0x8] sm:$0xff] }
 0x114   : > { %1364 = vst.msk [vmem:[#allocation2] sm:$0xff] %vm505_vm2, %v1332_v54  ;;  %v1333_v61 = vadd.f32 %v1208_v37, %v968_v59  ;;  %940 = vst.msk [vmem:[#allocation2 + $0x28] sm:$0xff] %vm505_vm2, %v908_v56  ;;  %v550_v37 = vld [vmem:[#allocation2 + $0x60] sm:$0xff]  ;;  %v551_v48 = vld [vmem:[#allocation2 + $0x68] sm:$0xff] }
 0x115   : > { %1367 = vst.msk [vmem:[#allocation2 + $0x18] sm:$0xff] %vm505_vm2, %v1335_v58 }
 0x116   : > { %1365 = vst.msk [vmem:[#allocation2 + $0x8] sm:$0xff] %vm505_vm2, %v1333_v61  ;;  %v2279_v63 = vpop.f32.mrb[24].mxu1 }
 0x117   : > { %v913_v0 = vadd.f32 %v2279_v63, %v548_v62  ;;  %v808_v2 = vpop.f32.mrb[25].mxu1  ;;  %v2313_v8 = vpop.f32.mrb[24].mxu0 }
 0x118   : > { %v973_v4 = vld [vmem:[#allocation2 + $0x30] sm:$0xff]  ;;  %v911_v5 = vadd.f32 %v808_v2, %v546_v1  ;;  %v2280_v7 = vpop.f32.mrb[26].mxu1  ;;  %v1237_v14 = vpop.f32.mrb[25].mxu0 }
 0x119   : > { %v1338_v9 = vadd.f32 %v2309_v47, %v973_v4  ;;  %945 = vst.msk [vmem:[#allocation2 + $0x50] sm:$0xff] %vm505_vm2, %v913_v0  ;;  %v971_v10 = vld [vmem:[#allocation2 + $0x20] sm:$0xff]  ;;  %v914_v11 = vadd.f32 %v2280_v7, %v549_v6  ;;  %v811_v13 = vpop.f32.mrb[27].mxu1  ;;  %v2314_v19 = vpop.f32.mrb[26].mxu0  ;;  %v556_v6 = vld [vmem:[#allocation2 + $0x90] sm:$0xff] }
 0x11a   : > { %v1398_v15 = vld [vmem:[#allocation2 + $0x10] sm:$0xff]  ;;  %v1336_v16 = vadd.f32 %v1221_v53, %v971_v10  ;;  %943 = vst.msk [vmem:[#allocation2 + $0x40] sm:$0xff] %vm505_vm2, %v911_v5  ;;  %v974_v17 = vld [vmem:[#allocation2 + $0x38] sm:$0xff]  ;;  %v912_v18 = vadd.f32 %v811_v13, %v547_v12  ;;  %v1240_v24 = vpop.f32.mrb[27].mxu0  ;;  %v554_v10 = vld [vmem:[#allocation2 + $0x80] sm:$0xff] }
 0x11b   : > { %v2737_v20 = vadd.f32 %v2732_v3, %v1398_v15  ;;  %v1396_v21 = vld [vmem:[#allocation2] sm:$0xff]  ;;  %1370 = vst.msk [vmem:[#allocation2 + $0x30] sm:$0xff] %vm505_vm2, %v1338_v9  ;;  %v1339_v22 = vadd.f32 %v2310_v57, %v974_v17  ;;  %946 = vst.msk [vmem:[#allocation2 + $0x58] sm:$0xff] %vm505_vm2, %v914_v11  ;;  %v972_v23 = vld [vmem:[#allocation2 + $0x28] sm:$0xff] }
 0x11c   : > { %v2742_v25 = vadd.f32 %v2732_v3, %v1396_v21  ;;  %v1399_v26 = vld [vmem:[#allocation2 + $0x18] sm:$0xff]  ;;  %1368 = vst.msk [vmem:[#allocation2 + $0x20] sm:$0xff] %vm505_vm2, %v1336_v16  ;;  %v1337_v27 = vadd.f32 %v1224_v60, %v972_v23  ;;  %944 = vst.msk [vmem:[#allocation2 + $0x48] sm:$0xff] %vm505_vm2, %v912_v18  ;;  %v555_v23 = vld [vmem:[#allocation2 + $0x88] sm:$0xff] }
 0x11d   : > { %v2085_v28 = vmul.f32 -1.442695, %v2737_v20  ;;  %v2748_v29 = vadd.f32 %v2732_v3, %v1399_v26  ;;  %v1397_v30 = vld [vmem:[#allocation2 + $0x8] sm:$0xff]  ;;  %1371 = vst.msk [vmem:[#allocation2 + $0x38] sm:$0xff] %vm505_vm2, %v1339_v22  ;;  %v557_v15 = vld [vmem:[#allocation2 + $0x98] sm:$0xff] }
 0x11e   : > { %v2083_v31 = vmul.f32 -1.442695, %v2742_v25  ;;  %v2753_v32 = vadd.f32 %v2732_v3, %v1397_v30  ;;  %1369 = vst.msk [vmem:[#allocation2 + $0x28] sm:$0xff] %vm505_vm2, %v1337_v27  ;;  %v2283_v34 = vpop.f32.mrb[28].mxu1 }
 0x11f   : > { %2401 = vpow2.f32 %v2085_v28  ;;  %v2086_v35 = vmul.f32 -1.442695, %v2748_v29  ;;  %v917_v36 = vadd.f32 %v2283_v34, %v552_v33  ;;  %v824_v38 = vpop.f32.mrb[29].mxu1  ;;  %v2317_v44 = vpop.f32.mrb[28].mxu0 }
 0x120   : > { %2403 = vpow2.f32 %v2083_v31  ;;  %v2084_v39 = vmul.f32 -1.442695, %v2753_v32  ;;  %v977_v40 = vld [vmem:[#allocation2 + $0x50] sm:$0xff]  ;;  %v915_v41 = vadd.f32 %v824_v38, %v550_v37  ;;  %v2284_v43 = vpop.f32.mrb[30].mxu1  ;;  %v1253_v50 = vpop.f32.mrb[29].mxu0 }
 0x121   : > { %2405 = vpow2.f32 %v2086_v35  ;;  %v1342_v45 = vadd.f32 %v2313_v8, %v977_v40  ;;  %949 = vst.msk [vmem:[#allocation2 + $0x70] sm:$0xff] %vm505_vm2, %v917_v36  ;;  %v975_v46 = vld [vmem:[#allocation2 + $0x40] sm:$0xff]  ;;  %v918_v47 = vadd.f32 %v2284_v43, %v553_v42  ;;  %v827_v49 = vpop.f32.mrb[31].mxu1  ;;  %v2318_v55 = vpop.f32.mrb[30].mxu0 }
 0x122   : > { %2407 = vpow2.f32 %v2084_v39  ;;  %v1402_v51 = vld [vmem:[#allocation2 + $0x30] sm:$0xff]  ;;  %v1340_v52 = vadd.f32 %v1237_v14, %v975_v46  ;;  %947 = vst.msk [vmem:[#allocation2 + $0x60] sm:$0xff] %vm505_vm2, %v915_v41  ;;  %v978_v53 = vld [vmem:[#allocation2 + $0x58] sm:$0xff]  ;;  %v916_v54 = vadd.f32 %v827_v49, %v551_v48  ;;  %v1256_v60 = vpop.f32.mrb[31].mxu0 }
 0x123   : > { %v2761_v56 = vadd.f32 %v2732_v3, %v1402_v51  ;;  %v1400_v57 = vld [vmem:[#allocation2 + $0x20] sm:$0xff]  ;;  %1374 = vst.msk [vmem:[#allocation2 + $0x50] sm:$0xff] %vm505_vm2, %v1342_v45  ;;  %v1343_v58 = vadd.f32 %v2314_v19, %v978_v53  ;;  %950 = vst.msk [vmem:[#allocation2 + $0x78] sm:$0xff] %vm505_vm2, %v918_v47  ;;  %v976_v59 = vld [vmem:[#allocation2 + $0x48] sm:$0xff] }
 0x124   : > { %v2766_v61 = vadd.f32 %v2732_v3, %v1400_v57  ;;  %v1403_v62 = vld [vmem:[#allocation2 + $0x38] sm:$0xff]  ;;  %1372 = vst.msk [vmem:[#allocation2 + $0x40] sm:$0xff] %vm505_vm2, %v1340_v52  ;;  %v1341_v63 = vadd.f32 %v1240_v24, %v976_v59  ;;  %948 = vst.msk [vmem:[#allocation2 + $0x68] sm:$0xff] %vm505_vm2, %v916_v54  ;;  %v560_v54 = vld [vmem:[#allocation2 + $0xb0] sm:$0xff] }
 0x125   : > { %v2089_v0 = vmul.f32 -1.442695, %v2761_v56  ;;  %v2772_v1 = vadd.f32 %v2732_v3, %v1403_v62  ;;  %v1401_v2 = vld [vmem:[#allocation2 + $0x28] sm:$0xff]  ;;  %1375 = vst.msk [vmem:[#allocation2 + $0x58] sm:$0xff] %vm505_vm2, %v1343_v58  ;;  %v558_v59 = vld [vmem:[#allocation2 + $0xa0] sm:$0xff] }
 0x126   : > { %v2087_v4 = vmul.f32 -1.442695, %v2766_v61  ;;  %v2777_v5 = vadd.f32 %v2732_v3, %v1401_v2  ;;  %1373 = vst.msk [vmem:[#allocation2 + $0x48] sm:$0xff] %vm505_vm2, %v1341_v63  ;;  %v2287_v7 = vpop.f32.mrb[32].mxu1  ;;  %v561_v2 = vld [vmem:[#allocation2 + $0xb8] sm:$0xff] }
 0x127   : > { %2409 = vpow2.f32 %v2089_v0  ;;  %v2090_v8 = vmul.f32 -1.442695, %v2772_v1  ;;  %v921_v9 = vadd.f32 %v2287_v7, %v556_v6  ;;  %v840_v11 = vpop.f32.mrb[33].mxu1  ;;  %v2321_v17 = vpop.f32.mrb[32].mxu0 }
 0x128   : > { %2411 = vpow2.f32 %v2087_v4  ;;  %v2088_v12 = vmul.f32 -1.442695, %v2777_v5  ;;  %v981_v13 = vld [vmem:[#allocation2 + $0x70] sm:$0xff]  ;;  %v919_v14 = vadd.f32 %v840_v11, %v554_v10  ;;  %v2288_v16 = vpop.f32.mrb[34].mxu1  ;;  %v2783_v26 = vpop.f32.mrb[33].mxu0  ;;  %v559_v11 = vld [vmem:[#allocation2 + $0xa8] sm:$0xff] }
 0x129   : > { %v2402_v18 = vpop.eup %2401  ;;  %2413 = vpow2.f32 %v2090_v8  ;;  %v1346_v19 = vadd.f32 %v2317_v44, %v981_v13  ;;  %953 = vst.msk [vmem:[#allocation2 + $0x90] sm:$0xff] %vm505_vm2, %v921_v9  ;;  %v979_v21 = vld [vmem:[#allocation2 + $0x60] sm:$0xff]  ;;  %v922_v22 = vadd.f32 %v2288_v16, %v557_v15  ;;  %v843_v24 = vpop.f32.mrb[35].mxu1 }
 0x12a   : > { %v2404_v27 = vpop.eup %2403  ;;  %v1565_v28 = vadd.f32 1.0, %v2402_v18  ;;  %2415 = vpow2.f32 %v2088_v12  ;;  %v1406_v30 = vld [vmem:[#allocation2 + $0x50] sm:$0xff]  ;;  %v1344_v31 = vadd.f32 %v1253_v50, %v979_v21  ;;  %951 = vst.msk [vmem:[#allocation2 + $0x80] sm:$0xff] %vm505_vm2, %v919_v14  ;;  %v982_v33 = vld [vmem:[#allocation2 + $0x78] sm:$0xff]  ;;  %v920_v34 = vadd.f32 %v843_v24, %v555_v23  ;;  %v2786_v35 = vpop.f32.mrb[34].mxu0 }
 0x12b   : > { %v2406_v36 = vpop.eup %2405  ;;  %v1563_v37 = vadd.f32 1.0, %v2404_v27  ;;  %v2789_v38 = vadd.f32 %v2732_v3, %v1406_v30  ;;  %v1404_v39 = vld [vmem:[#allocation2 + $0x40] sm:$0xff]  ;;  %1378 = vst.msk [vmem:[#allocation2 + $0x70] sm:$0xff] %vm505_vm2, %v1346_v19  ;;  %v1347_v40 = vadd.f32 %v2318_v55, %v982_v33  ;;  %954 = vst.msk [vmem:[#allocation2 + $0x98] sm:$0xff] %vm505_vm2, %v922_v22  ;;  %v980_v41 = vld [vmem:[#allocation2 + $0x68] sm:$0xff]  ;;  %v2793_v42 = vpop.f32.mrb[35].mxu0 }
 0x12c   : > { %v2408_v43 = vpop.eup %2407  ;;  %2417 = vrcp.f32 %v1565_v28  ;;  %v1566_v44 = vadd.f32 1.0, %v2406_v36  ;;  %v2796_v45 = vadd.f32 %v2732_v3, %v1404_v39  ;;  %v1407_v46 = vld [vmem:[#allocation2 + $0x58] sm:$0xff]  ;;  %1376 = vst.msk [vmem:[#allocation2 + $0x60] sm:$0xff] %vm505_vm2, %v1344_v31  ;;  %v1345_v47 = vadd.f32 %v1256_v60, %v980_v41  ;;  %952 = vst.msk [vmem:[#allocation2 + $0x88] sm:$0xff] %vm505_vm2, %v920_v34 }
 0x12d   : > { %2419 = vrcp.f32 %v1563_v37  ;;  %v1564_v48 = vadd.f32 1.0, %v2408_v43  ;;  %v2093_v49 = vmul.f32 -1.442695, %v2789_v38  ;;  %v2802_v50 = vadd.f32 %v2732_v3, %v1407_v46  ;;  %v1405_v51 = vld [vmem:[#allocation2 + $0x48] sm:$0xff]  ;;  %1379 = vst.msk [vmem:[#allocation2 + $0x78] sm:$0xff] %vm505_vm2, %v1347_v40  ;;  %v564_v46 = vld [vmem:[#allocation2 + $0xd0] sm:$0xff] }
 0x12e   : > { %2421 = vrcp.f32 %v1566_v44  ;;  %v2091_v52 = vmul.f32 -1.442695, %v2796_v45  ;;  %v2807_v53 = vadd.f32 %v2732_v3, %v1405_v51  ;;  %1377 = vst.msk [vmem:[#allocation2 + $0x68] sm:$0xff] %vm505_vm2, %v1345_v47  ;;  %v2291_v55 = vpop.f32.mrb[36].mxu1 }
 0x12f   : > { %2423 = vrcp.f32 %v1564_v48  ;;  %v2094_v57 = vmul.f32 -1.442695, %v2802_v50  ;;  %v925_v58 = vadd.f32 %v2291_v55, %v560_v54  ;;  %v856_v60 = vpop.f32.mrb[37].mxu1  ;;  %v2812_v6 = vpop.f32.mrb[36].mxu0  ;;  %v562_v54 = vld [vmem:[#allocation2 + $0xc0] sm:$0xff] }
 0x130   : > { %2425 = vpow2.f32 %v2093_v49  ;;  %v2092_v62 = vmul.f32 -1.442695, %v2807_v53  ;;  %v985_v63 = vld [vmem:[#allocation2 + $0x90] sm:$0xff]  ;;  %v923_v0 = vadd.f32 %v856_v60, %v558_v59  ;;  %v2292_v4 = vpop.f32.mrb[38].mxu1  ;;  %v2815_v13 = vpop.f32.mrb[37].mxu0 }
 0x131   : > { %v2410_v7 = vpop.eup %2409  ;;  %2427 = vpow2.f32 %v2091_v52  ;;  %v1350_v8 = vadd.f32 %v2321_v17, %v985_v63  ;;  %957 = vst.msk [vmem:[#allocation2 + $0xb0] sm:$0xff] %vm505_vm2, %v925_v58  ;;  %v983_v9 = vld [vmem:[#allocation2 + $0x80] sm:$0xff]  ;;  %v926_v10 = vadd.f32 %v2292_v4, %v561_v2  ;;  %v859_v12 = vpop.f32.mrb[39].mxu1 }
 0x132   : > { %v2412_v14 = vpop.eup %2411  ;;  %v1569_v15 = vadd.f32 1.0, %v2410_v7  ;;  %2429 = vpow2.f32 %v2094_v57  ;;  %v1410_v16 = vld [vmem:[#allocation2 + $0x70] sm:$0xff]  ;;  %v1348_v18 = vadd.f32 %v2783_v26, %v983_v9  ;;  %955 = vst.msk [vmem:[#allocation2 + $0xa0] sm:$0xff] %vm505_vm2, %v923_v0  ;;  %v986_v19 = vld [vmem:[#allocation2 + $0x98] sm:$0xff]  ;;  %v924_v21 = vadd.f32 %v859_v12, %v559_v11  ;;  %v2819_v22 = vpop.f32.mrb[38].mxu0 }
 0x133   : > { %v2414_v17 = vpop.eup %2413  ;;  %v1567_v23 = vadd.f32 1.0, %v2412_v14  ;;  %2431 = vpow2.f32 %v2092_v62  ;;  %v2822_v24 = vadd.f32 %v2732_v3, %v1410_v16  ;;  %v1408_v27 = vld [vmem:[#allocation2 + $0x60] sm:$0xff]  ;;  %1382 = vst.msk [vmem:[#allocation2 + $0x90] sm:$0xff] %vm505_vm2, %v1350_v8  ;;  %v1351_v28 = vadd.f32 %v2786_v35, %v986_v19  ;;  %958 = vst.msk [vmem:[#allocation2 + $0xb8] sm:$0xff] %vm505_vm2, %v926_v10  ;;  %v984_v26 = vld [vmem:[#allocation2 + $0x88] sm:$0xff]  ;;  %v2827_v30 = vpop.f32.mrb[39].mxu0 }
 0x134   : > { %v2416_v31 = vpop.eup %2415  ;;  %2433 = vrcp.f32 %v1569_v15  ;;  %v1570_v33 = vadd.f32 1.0, %v2414_v17  ;;  %v2830_v34 = vadd.f32 %v2732_v3, %v1408_v27  ;;  %v1411_v36 = vld [vmem:[#allocation2 + $0x78] sm:$0xff]  ;;  %1380 = vst.msk [vmem:[#allocation2 + $0x80] sm:$0xff] %vm505_vm2, %v1348_v18  ;;  %v1349_v37 = vadd.f32 %v2793_v42, %v984_v26  ;;  %956 = vst.msk [vmem:[#allocation2 + $0xa8] sm:$0xff] %vm505_vm2, %v924_v21 }
 0x135   : > { %2435 = vrcp.f32 %v1567_v23  ;;  %v1568_v35 = vadd.f32 1.0, %v2416_v31  ;;  %v2097_v39 = vmul.f32 -1.442695, %v2822_v24  ;;  %v2838_v40 = vadd.f32 %v2732_v3, %v1411_v36  ;;  %v1409_v41 = vld [vmem:[#allocation2 + $0x68] sm:$0xff]  ;;  %1383 = vst.msk [vmem:[#allocation2 + $0x98] sm:$0xff] %vm505_vm2, %v1351_v28 }
 0x136   : > { %v2418_v43 = vpop.eup %2417  ;;  %2437 = vrcp.f32 %v1570_v33  ;;  %v2095_v44 = vmul.f32 -1.442695, %v2830_v34  ;;  %v2843_v42 = vadd.f32 %v2732_v3, %v1409_v41  ;;  %1381 = vst.msk [vmem:[#allocation2 + $0x88] sm:$0xff] %vm505_vm2, %v1349_v37  ;;  %v2295_v47 = vpop.f32.mrb[40].mxu1 }
 0x137   : > { %v2420_v48 = vpop.eup %2419  ;;  %v1661_v49 = vmul.f32 %v2418_v43, %v2737_v20  ;;  %2439 = vrcp.f32 %v1568_v35  ;;  %v2098_v51 = vmul.f32 -1.442695, %v2838_v40  ;;  %v929_v52 = vadd.f32 %v2295_v47, %v564_v46  ;;  %v872_v55 = vpop.f32.mrb[41].mxu1  ;;  %v565_v47 = vld [vmem:[#allocation2 + $0xd8] sm:$0xff] }
 0x138   : > { %v2422_v57 = vpop.eup %2421  ;;  %v1659_v58 = vmul.f32 %v2420_v48, %v2742_v25  ;;  %2441 = vpow2.f32 %v2097_v39  ;;  %v2096_v59 = vmul.f32 -1.442695, %v2843_v42  ;;  %v989_v60 = vld [vmem:[#allocation2 + $0xb0] sm:$0xff]  ;;  %v927_v62 = vadd.f32 %v872_v55, %v562_v54  ;;  %v2296_v20 = vpop.f32.mrb[42].mxu1 }
 0x139   : > { %v2855_v63 = vpop.f32.mrb[40].mxu0  ;;  %v2424_v0 = vpop.eup %2423  ;;  %v2152_v2 = vpack.c.bf16 %v1661_v49, %v1661_v49  ;;  %v1662_v4 = vmul.f32 %v2422_v57, %v2748_v29  ;;  %2443 = vpow2.f32 %v2095_v44  ;;  %v1354_v7 = vadd.f32 %v2812_v6, %v989_v60  ;;  %961 = vst.msk [vmem:[#allocation2 + $0xd0] sm:$0xff] %vm505_vm2, %v929_v52  ;;  %v987_v8 = vld [vmem:[#allocation2 + $0xa0] sm:$0xff] }
 0x13a   : > { %v2860_v25 = vpop.f32.mrb[43].mxu1  ;;  %v2862_v9 = vpop.f32.mrb[41].mxu0  ;;  %v2150_v11 = vpack.c.bf16 %v1659_v58, %v1659_v58  ;;  %v1660_v12 = vmul.f32 %v2424_v0, %v2753_v32  ;;  %2445 = vpow2.f32 %v2098_v51  ;;  %v1414_v14 = vld [vmem:[#allocation2 + $0x90] sm:$0xff]  ;;  %v1352_v29 = vadd.f32 %v2815_v13, %v987_v8  ;;  %959 = vst.msk [vmem:[#allocation2 + $0xc0] sm:$0xff] %vm505_vm2, %v927_v62  ;;  %v990_v15 = vld [vmem:[#allocation2 + $0xb8] sm:$0xff]  ;;  %v563_v62 = vld [vmem:[#allocation2 + $0xc8] sm:$0xff] }
 0x13b   : > { %v2426_v10 = vpop.eup %2425  ;;  %v2867_v6 = vpop.f32.mrb[42].mxu0  ;;  %1822 = vst.msk [vmem:[%s2851_s29 + $0x8] sm:$0xf] %vm1819_vm3, %v2152_v2  ;;  %v2153_v18 = vpack.c.bf16 %v1662_v4, %v1662_v4  ;;  %2447 = vpow2.f32 %v2096_v59  ;;  %v2872_v21 = vadd.f32 %v2732_v3, %v1414_v14  ;;  %v1412_v32 = vld [vmem:[#allocation2 + $0x80] sm:$0xff]  ;;  %v1355_v31 = vadd.f32 %v2819_v22, %v990_v15  ;;  %v988_v41 = vld [vmem:[#allocation2 + $0xa8] sm:$0xff] }
 0x13c   : > { %v2428_v16 = vpop.eup %2427  ;;  %v1573_v19 = vadd.f32 1.0, %v2426_v10  ;;  %1386 = vst.msk [vmem:[#allocation2 + $0xb0] sm:$0xff] %vm505_vm2, %v1354_v7  ;;  %v2875_v17 = vpop.f32.mrb[43].mxu0  ;;  %v2151_v23 = vpack.c.bf16 %v1660_v12, %v1660_v12  ;;  %v2880_v28 = vadd.f32 %v2732_v3, %v1412_v32  ;;  %v1415_v26 = vld [vmem:[#allocation2 + $0x98] sm:$0xff]  ;;  %1384 = vst.msk [vmem:[#allocation2 + $0xa0] sm:$0xff] %vm505_vm2, %v1352_v29  ;;  %v930_v54 = vadd.f32 %v2296_v20, %v565_v47 }
 0x13d   : > { %v2430_v13 = vpop.eup %2429  ;;  %1820 = vst.msk [vmem:[%s2851_s29] sm:$0xf] %vm1819_vm3, %v2150_v11  ;;  %v1571_v27 = vadd.f32 1.0, %v2428_v16  ;;  %1823 = vst.msk [vmem:[%s2851_s29 + $0xc] sm:$0xf] %vm1819_vm3, %v2153_v18  ;;  %v2888_v35 = vadd.f32 %v2732_v3, %v1415_v26  ;;  %v1413_v39 = vld [vmem:[#allocation2 + $0x88] sm:$0xff]  ;;  %v1353_v60 = vadd.f32 %v2827_v30, %v988_v41 }
 0x13e   : > { %v2432_v33 = vpop.eup %2431  ;;  %2449 = vrcp.f32 %v1573_v19  ;;  %v1574_v36 = vadd.f32 1.0, %v2430_v13  ;;  %v2101_v37 = vmul.f32 -1.442695, %v2872_v21  ;;  %1821 = vst.msk [vmem:[%s2851_s29 + $0x4] sm:$0xf] %vm1819_vm3, %v2151_v23  ;;  %v2894_v22 = vadd.f32 %v2732_v3, %v1413_v39  ;;  %v2299_v48 = vpop.f32.mrb[44].mxu1 }
 0x13f   : > { %v2434_v43 = vpop.eup %2433  ;;  %2451 = vrcp.f32 %v1571_v27  ;;  %v1572_v44 = vadd.f32 1.0, %v2432_v33  ;;  %v2099_v46 = vmul.f32 -1.442695, %v2880_v28  ;;  %1387 = vst.msk [vmem:[#allocation2 + $0xb8] sm:$0xff] %vm505_vm2, %v1355_v31  ;;  %v2102_v52 = vmul.f32 -1.442695, %v2888_v35 }
 0x140   : > { %v2436_v49 = vpop.eup %2435  ;;  %v1665_v51 = vmul.f32 %v2434_v43, %v2761_v56  ;;  %2453 = vrcp.f32 %v1574_v36  ;;  %v888_v55 = vpop.f32.mrb[45].mxu1  ;;  %v2100_v59 = vmul.f32 -1.442695, %v2894_v22  ;;  %v993_v0 = vld [vmem:[#allocation2 + $0xd0] sm:$0xff]  ;;  %962 = vst.msk [vmem:[#allocation2 + $0xd8] sm:$0xff] %vm505_vm2, %v930_v54  ;;  %1385 = vst.msk [vmem:[#allocation2 + $0xa8] sm:$0xff] %vm505_vm2, %v1353_v60 }
 0x141   : > { %v2438_v57 = vpop.eup %2437  ;;  %v1663_v58 = vmul.f32 %v2436_v49, %v2766_v61  ;;  %2455 = vrcp.f32 %v1572_v44  ;;  %v2300_v2 = vpop.f32.mrb[46].mxu1  ;;  %v928_v61 = vadd.f32 %v2860_v25, %v563_v62  ;;  %v1358_v29 = vadd.f32 %v2855_v63, %v993_v0  ;;  %v568_v27 = vld [vmem:[#allocation2 + $0xf0] sm:$0xff]  ;;  %v991_v26 = vld [vmem:[#allocation2 + $0xc0] sm:$0xff]  ;;  %v569_v47 = vld [vmem:[#allocation2 + $0xf8] sm:$0xff] }
 0x142   : > { %v2902_v4 = vpop.f32.mrb[44].mxu0  ;;  %v2440_v7 = vpop.eup %2439  ;;  %v2156_v56 = vpack.c.bf16 %v1665_v51, %v1665_v51  ;;  %v1666_v8 = vmul.f32 %v2438_v57, %v2772_v1  ;;  %2457 = vpow2.f32 %v2101_v37  ;;  %v933_v39 = vadd.f32 %v2299_v48, %v568_v27  ;;  %v567_v48 = vld [vmem:[#allocation2 + $0xe8] sm:$0xff] }
 0x143   : > { %v891_v20 = vpop.f32.mrb[47].mxu1  ;;  %v2907_v10 = vpop.f32.mrb[45].mxu0  ;;  %v2154_v30 = vpack.c.bf16 %v1663_v58, %v1663_v58  ;;  %v1664_v12 = vmul.f32 %v2440_v7, %v2777_v5  ;;  %2459 = vpow2.f32 %v2099_v46  ;;  %v1418_v14 = vld [vmem:[#allocation2 + $0xb0] sm:$0xff]  ;;  %v1416_v5 = vld [vmem:[#allocation2 + $0xa0] sm:$0xff]  ;;  %960 = vst.msk [vmem:[#allocation2 + $0xc8] sm:$0xff] %vm505_vm2, %v928_v61  ;;  %1390 = vst.msk [vmem:[#allocation2 + $0xd0] sm:$0xff] %vm505_vm2, %v1358_v29  ;;  %v1356_v51 = vadd.f32 %v2862_v9, %v991_v26 }
 0x144   : > { %v2442_v11 = vpop.eup %2441  ;;  %v2912_v1 = vpop.f32.mrb[46].mxu0  ;;  %1826 = vst.msk [vmem:[%s2851_s29 + $0x18] sm:$0xf] %vm1819_vm3, %v2156_v56  ;;  %v2157_v25 = vpack.c.bf16 %v1666_v8, %v1666_v8  ;;  %2461 = vpow2.f32 %v2102_v52  ;;  %v2917_v18 = vadd.f32 %v2732_v3, %v1418_v14  ;;  %v2925_v23 = vadd.f32 %v2732_v3, %v1416_v5  ;;  %v566_v46 = vld [vmem:[#allocation2 + $0xe0] sm:$0xff] }
 0x145   : > { %v2444_v15 = vpop.eup %2443  ;;  %v1577_v16 = vadd.f32 1.0, %v2442_v11  ;;  %v2920_v19 = vpop.f32.mrb[47].mxu0  ;;  %1824 = vst.msk [vmem:[%s2851_s29 + $0x10] sm:$0xf] %vm1819_vm3, %v2154_v30  ;;  %v2155_v63 = vpack.c.bf16 %v1664_v12, %v1664_v12  ;;  %2463 = vpow2.f32 %v2100_v59  ;;  %v931_v52 = vadd.f32 %v888_v55, %v566_v46 }
 0x146   : > { %v2446_v32 = vpop.eup %2445  ;;  %v1575_v13 = vadd.f32 1.0, %v2444_v15  ;;  %1827 = vst.msk [vmem:[%s2851_s29 + $0x1c] sm:$0xf] %vm1819_vm3, %v2157_v25  ;;  %v2105_v36 = vmul.f32 -1.442695, %v2917_v18  ;;  %v1419_v37 = vld [vmem:[#allocation2 + $0xb8] sm:$0xff]  ;;  %v934_v54 = vadd.f32 %v2300_v2, %v569_v47  ;;  %v932_v62 = vadd.f32 %v891_v20, %v567_v48 }
 0x147   : > { %v2448_v31 = vpop.eup %2447  ;;  %2465 = vrcp.f32 %v1577_v16  ;;  %v1578_v33 = vadd.f32 1.0, %v2446_v32  ;;  %1825 = vst.msk [vmem:[%s2851_s29 + $0x14] sm:$0xf] %vm1819_vm3, %v2155_v63  ;;  %v2103_v43 = vmul.f32 -1.442695, %v2925_v23  ;;  %v2935_v44 = vadd.f32 %v2732_v3, %v1419_v37  ;;  %v994_v60 = vld [vmem:[#allocation2 + $0xd8] sm:$0xff] }
 0x148   : > { %2467 = vrcp.f32 %v1575_v13  ;;  %v1576_v41 = vadd.f32 1.0, %v2448_v31  ;;  %v2450_v49 = vpop.eup %2449  ;;  %965 = vst.msk [vmem:[#allocation2 + $0xf0] sm:$0xff] %vm505_vm2, %v933_v39  ;;  %v1417_v56 = vld [vmem:[#allocation2 + $0xa8] sm:$0xff]  ;;  %1388 = vst.msk [vmem:[#allocation2 + $0xc0] sm:$0xff] %vm505_vm2, %v1356_v51  ;;  %v1359_v9 = vadd.f32 %v2867_v6, %v994_v60 }
 0x149   : > { %2469 = vrcp.f32 %v1578_v33  ;;  %v2452_v57 = vpop.eup %2451  ;;  %v1669_v58 = vmul.f32 %v2450_v49, %v2789_v38  ;;  %v2106_v59 = vmul.f32 -1.442695, %v2935_v44  ;;  %963 = vst.msk [vmem:[#allocation2 + $0xe0] sm:$0xff] %vm505_vm2, %v931_v52  ;;  %966 = vst.msk [vmem:[#allocation2 + $0xf8] sm:$0xff] %vm505_vm2, %v934_v54  ;;  %v2948_v8 = vadd.f32 %v2732_v3, %v1417_v56 }
 0x14a   : > { %2471 = vrcp.f32 %v1576_v41  ;;  %v2454_v0 = vpop.eup %2453  ;;  %v1667_v7 = vmul.f32 %v2452_v57, %v2796_v45  ;;  %v992_v45 = vld [vmem:[#allocation2 + $0xc8] sm:$0xff]  ;;  %964 = vst.msk [vmem:[#allocation2 + $0xe8] sm:$0xff] %vm505_vm2, %v932_v62  ;;  %v1422_v6 = vld [vmem:[#allocation2 + $0xd0] sm:$0xff]  ;;  %1391 = vst.msk [vmem:[#allocation2 + $0xd8] sm:$0xff] %vm505_vm2, %v1359_v9 }
 0x14b   : > { %2473 = vpow2.f32 %v2105_v36  ;;  %v2456_v38 = vpop.eup %2455  ;;  %v2160_v55 = vpack.c.bf16 %v1669_v58, %v1669_v58  ;;  %v1670_v2 = vmul.f32 %v2454_v0, %v2802_v50  ;;  %v1357_v30 = vadd.f32 %v2875_v17, %v992_v45 }
 0x14c   : > { %2475 = vpow2.f32 %v2103_v43  ;;  %v2458_v61 = vpop.eup %2457  ;;  %v2158_v20 = vpack.c.bf16 %v1667_v7, %v1667_v7  ;;  %v1668_v11 = vmul.f32 %v2456_v38, %v2807_v53  ;;  %v2957_v29 = vadd.f32 %v2732_v3, %v1422_v6 }
 0x14d   : > { %2477 = vpow2.f32 %v2106_v59  ;;  %v2460_v50 = vpop.eup %2459  ;;  %1830 = vst.msk [vmem:[%s2851_s29 + $0x28] sm:$0xf] %vm1819_vm3, %v2160_v55  ;;  %v2161_v12 = vpack.c.bf16 %v1670_v2, %v1670_v2  ;;  %v1581_v14 = vadd.f32 1.0, %v2458_v61  ;;  %v2104_v5 = vmul.f32 -1.442695, %v2948_v8 }
 0x14e   : > { %v2462_v15 = vpop.eup %2461  ;;  %1828 = vst.msk [vmem:[%s2851_s29 + $0x20] sm:$0xf] %vm1819_vm3, %v2158_v20  ;;  %v2159_v53 = vpack.c.bf16 %v1668_v11, %v1668_v11  ;;  %v1579_v25 = vadd.f32 1.0, %v2460_v50  ;;  %v2109_v27 = vmul.f32 -1.442695, %v2957_v29 }
 0x14f   : > { %1389 = vst.msk [vmem:[#allocation2 + $0xc8] sm:$0xff] %vm505_vm2, %v1357_v30  ;;  %v2464_v16 = vpop.eup %2463  ;;  %2479 = vrcp.f32 %v1581_v14  ;;  %v1582_v17 = vadd.f32 1.0, %v2462_v15  ;;  %v997_v32 = vld [vmem:[#allocation2 + $0xf0] sm:$0xff]  ;;  %v1420_v36 = vld [vmem:[#allocation2 + $0xc0] sm:$0xff] }
 0x150   : > { %1831 = vst.msk [vmem:[%s2851_s29 + $0x2c] sm:$0xf] %vm1819_vm3, %v2161_v12  ;;  %1829 = vst.msk [vmem:[%s2851_s29 + $0x24] sm:$0xf] %vm1819_vm3, %v2159_v53  ;;  %2481 = vrcp.f32 %v1579_v25  ;;  %v1580_v13 = vadd.f32 1.0, %v2464_v16  ;;  %v1362_v26 = vadd.f32 %v2902_v4, %v997_v32  ;;  %v995_v37 = vld [vmem:[#allocation2 + $0xe0] sm:$0xff]  ;;  %v2972_v46 = vadd.f32 %v2732_v3, %v1420_v36 }
 0x151   : > { %v2466_v63 = vpop.eup %2465  ;;  %2483 = vrcp.f32 %v1582_v17  ;;  %v998_v39 = vld [vmem:[#allocation2 + $0xf8] sm:$0xff]  ;;  %v1360_v47 = vadd.f32 %v2907_v10, %v995_v37  ;;  %v996_v4 = vld [vmem:[#allocation2 + $0xe8] sm:$0xff] }
 0x152   : > { %v2468_v31 = vpop.eup %2467  ;;  %v1673_v33 = vmul.f32 %v2466_v63, %v2822_v24  ;;  %2485 = vrcp.f32 %v1580_v13  ;;  %1394 = vst.msk [vmem:[#allocation2 + $0xf0] sm:$0xff] %vm505_vm2, %v1362_v26  ;;  %v1423_v52 = vld [vmem:[#allocation2 + $0xd8] sm:$0xff]  ;;  %v1363_v54 = vadd.f32 %v2912_v1, %v998_v39  ;;  %v2107_v58 = vmul.f32 -1.442695, %v2972_v46 }
 0x153   : > { %v2470_v41 = vpop.eup %2469  ;;  %v1671_v43 = vmul.f32 %v2468_v31, %v2830_v34  ;;  %2487 = vpow2.f32 %v2104_v5  ;;  %1392 = vst.msk [vmem:[#allocation2 + $0xe0] sm:$0xff] %vm505_vm2, %v1360_v47  ;;  %v2984_v60 = vadd.f32 %v2732_v3, %v1423_v52 }
 0x154   : > { %v2472_v49 = vpop.eup %2471  ;;  %v2164_v51 = vpack.c.bf16 %v1673_v33, %v1673_v33  ;;  %v1674_v24 = vmul.f32 %v2470_v41, %v2838_v40  ;;  %2489 = vpow2.f32 %v2109_v27  ;;  %1395 = vst.msk [vmem:[#allocation2 + $0xf8] sm:$0xff] %vm505_vm2, %v1363_v54 }
 0x155   : > { %v2474_v34 = vpop.eup %2473  ;;  %v2162_v48 = vpack.c.bf16 %v1671_v43, %v1671_v43  ;;  %v1672_v57 = vmul.f32 %v2472_v49, %v2843_v42  ;;  %v1361_v42 = vadd.f32 %v2920_v19, %v996_v4  ;;  %2491 = vpow2.f32 %v2107_v58 }
 0x156   : > { %v2476_v10 = vpop.eup %2475  ;;  %1834 = vst.msk [vmem:[%s2851_s29 + $0x38] sm:$0xf] %vm1819_vm3, %v2164_v51  ;;  %v2165_v59 = vpack.c.bf16 %v1674_v24, %v1674_v24  ;;  %v1585_v40 = vadd.f32 1.0, %v2474_v34  ;;  %v1421_v1 = vld [vmem:[#allocation2 + $0xc8] sm:$0xff]  ;;  %v2110_v38 = vmul.f32 -1.442695, %v2984_v60 }
 0x157   : > { %v2478_v62 = vpop.eup %2477  ;;  %1832 = vst.msk [vmem:[%s2851_s29 + $0x30] sm:$0xf] %vm1819_vm3, %v2162_v48  ;;  %v2163_v0 = vpack.c.bf16 %v1672_v57, %v1672_v57  ;;  %v1583_v7 = vadd.f32 1.0, %v2476_v10  ;;  %v2991_v56 = vadd.f32 %v2732_v3, %v1421_v1 }
 0x158   : > { %1835 = vst.msk [vmem:[%s2851_s29 + $0x3c] sm:$0xf] %vm1819_vm3, %v2165_v59  ;;  %2493 = vrcp.f32 %v1585_v40  ;;  %v1586_v9 = vadd.f32 1.0, %v2478_v62 }
 0x159   : > { %1393 = vst.msk [vmem:[#allocation2 + $0xe8] sm:$0xff] %vm505_vm2, %v1361_v42  ;;  %2495 = vrcp.f32 %v1583_v7  ;;  %v2108_v19 = vmul.f32 -1.442695, %v2991_v56  ;;  %v2480_v55 = vpop.eup %2479  ;;  %v1426_v2 = vld [vmem:[#allocation2 + $0xf0] sm:$0xff] }
 0x15a   : > { %1833 = vst.msk [vmem:[%s2851_s29 + $0x34] sm:$0xf] %vm1819_vm3, %v2163_v0  ;;  %2497 = vrcp.f32 %v1586_v9  ;;  %v2482_v45 = vpop.eup %2481  ;;  %v1677_v61 = vmul.f32 %v2480_v55, %v2872_v21  ;;  %v3002_v20 = vadd.f32 %v2732_v3, %v1426_v2  ;;  %v1424_v30 = vld [vmem:[#allocation2 + $0xe0] sm:$0xff] }
 0x15b   : > { %2499 = vpow2.f32 %v2110_v38  ;;  %v2484_v11 = vpop.eup %2483  ;;  %v1675_v6 = vmul.f32 %v2482_v45, %v2880_v28  ;;  %v3008_v53 = vadd.f32 %v2732_v3, %v1424_v30  ;;  %v1427_v21 = vld [vmem:[#allocation2 + $0xf8] sm:$0xff] }
 0x15c   : > { %2501 = vpow2.f32 %v2108_v19  ;;  %v2486_v50 = vpop.eup %2485  ;;  %v2168_v12 = vpack.c.bf16 %v1677_v61, %v1677_v61  ;;  %v1678_v14 = vmul.f32 %v2484_v11, %v2888_v35  ;;  %v2113_v15 = vmul.f32 -1.442695, %v3002_v20 }
 0x15d   : > { %v2488_v25 = vpop.eup %2487  ;;  %v2166_v16 = vpack.c.bf16 %v1675_v6, %v1675_v6  ;;  %v1676_v17 = vmul.f32 %v2486_v50, %v2894_v22  ;;  %v3012_v28 = vadd.f32 %v2732_v3, %v1427_v21  ;;  %v2111_v63 = vmul.f32 -1.442695, %v3008_v53 }
 0x15e   : > { %v2490_v5 = vpop.eup %2489  ;;  %1838 = vst.msk [vmem:[%s2851_s29 + $0x48] sm:$0xf] %vm1819_vm3, %v2168_v12  ;;  %v2169_v32 = vpack.c.bf16 %v1678_v14, %v1678_v14  ;;  %v1584_v35 = vadd.f32 1.0, %v2488_v25  ;;  %2503 = vpow2.f32 %v2113_v15 }
 0x15f   : > { %1836 = vst.msk [vmem:[%s2851_s29 + $0x40] sm:$0xf] %vm1819_vm3, %v2166_v16  ;;  %v2167_v27 = vpack.c.bf16 %v1676_v17, %v1676_v17  ;;  %v1589_v26 = vadd.f32 1.0, %v2490_v5  ;;  %v2492_v22 = vpop.eup %2491  ;;  %v2114_v33 = vmul.f32 -1.442695, %v3012_v28 }
 0x160   : > { %v1425_v13 = vld [vmem:[#allocation2 + $0xe8] sm:$0xff]  ;;  %1839 = vst.msk [vmem:[%s2851_s29 + $0x4c] sm:$0xf] %vm1819_vm3, %v2169_v32  ;;  %2505 = vrcp.f32 %v1584_v35  ;;  %v1587_v37 = vadd.f32 1.0, %v2492_v22 }
 0x161   : > { %v3020_v31 = vadd.f32 %v2732_v3, %v1425_v13  ;;  %1837 = vst.msk [vmem:[%s2851_s29 + $0x44] sm:$0xf] %vm1819_vm3, %v2167_v27  ;;  %2507 = vrcp.f32 %v1589_v26 }
 0x162   : > { %v2494_v36 = vpop.eup %2493  ;;  %2509 = vpow2.f32 %v2111_v63 }
 0x163   : > { %v2112_v39 = vmul.f32 -1.442695, %v3020_v31  ;;  %v2496_v41 = vpop.eup %2495  ;;  %v1681_v43 = vmul.f32 %v2494_v36, %v2917_v18  ;;  %2511 = vrcp.f32 %v1587_v37 }
 0x164   : > { %v2498_v3 = vpop.eup %2497  ;;  %v1679_v47 = vmul.f32 %v2496_v41, %v2925_v23  ;;  %2513 = vpow2.f32 %v2114_v33 }
 0x165   : > { %v2500_v4 = vpop.eup %2499  ;;  %v2172_v49 = vpack.c.bf16 %v1681_v43, %v1681_v43  ;;  %v1682_v51 = vmul.f32 %v2498_v3, %v2935_v44  ;;  %2515 = vpow2.f32 %v2112_v39 }
 0x166   : > { %v2502_v24 = vpop.eup %2501  ;;  %v2170_v52 = vpack.c.bf16 %v1679_v47, %v1679_v47  ;;  %v1590_v54 = vadd.f32 1.0, %v2500_v4 }
 0x167   : > { %1842 = vst.msk [vmem:[%s2851_s29 + $0x58] sm:$0xf] %vm1819_vm3, %v2172_v49  ;;  %v2173_v34 = vpack.c.bf16 %v1682_v51, %v1682_v51  ;;  %v1588_v18 = vadd.f32 1.0, %v2502_v24 }
 0x168   : > { %1840 = vst.msk [vmem:[%s2851_s29 + $0x50] sm:$0xf] %vm1819_vm3, %v2170_v52  ;;  %2517 = vrcp.f32 %v1590_v54  ;;  %v2504_v48 = vpop.eup %2503 }
 0x169   : > { %1843 = vst.msk [vmem:[%s2851_s29 + $0x5c] sm:$0xf] %vm1819_vm3, %v2173_v34  ;;  %2519 = vrcp.f32 %v1588_v18  ;;  %v1593_v23 = vadd.f32 1.0, %v2504_v48 }
 0x16a   : > { %v2506_v57 = vpop.eup %2505 }
 0x16b   : > { %v2508_v44 = vpop.eup %2507  ;;  %v1680_v58 = vmul.f32 %v2506_v57, %v2948_v8  ;;  %2521 = vrcp.f32 %v1593_v23 }
 0x16c   : > { %v2510_v10 = vpop.eup %2509  ;;  %v1685_v59 = vmul.f32 %v2508_v44, %v2957_v29 }
 0x16d   : > { %v2512_v40 = vpop.eup %2511  ;;  %v2171_v1 = vpack.c.bf16 %v1680_v58, %v1680_v58  ;;  %v1591_v42 = vadd.f32 1.0, %v2510_v10 }
 0x16e   : > { %v2514_v62 = vpop.eup %2513  ;;  %v2176_v0 = vpack.c.bf16 %v1685_v59, %v1685_v59  ;;  %v1683_v7 = vmul.f32 %v2512_v40, %v2972_v46 }
 0x16f   : > { %v2516_v9 = vpop.eup %2515  ;;  %1841 = vst.msk [vmem:[%s2851_s29 + $0x54] sm:$0xf] %vm1819_vm3, %v2171_v1  ;;  %2523 = vrcp.f32 %v1591_v42  ;;  %v1594_v38 = vadd.f32 1.0, %v2514_v62 }
 0x170   : > { %1846 = vst.msk [vmem:[%s2851_s29 + $0x68] sm:$0xf] %vm1819_vm3, %v2176_v0  ;;  %v2174_v8 = vpack.c.bf16 %v1683_v7, %v1683_v7  ;;  %v1592_v19 = vadd.f32 1.0, %v2516_v9 }
 0x171   : > { %2525 = vrcp.f32 %v1594_v38 }
 0x172   : > { %v2518_v29 = vpop.eup %2517  ;;  %1844 = vst.msk [vmem:[%s2851_s29 + $0x60] sm:$0xf] %vm1819_vm3, %v2174_v8  ;;  %2527 = vrcp.f32 %v1592_v19 }
 0x173   : > { %v2520_v55 = vpop.eup %2519  ;;  %v1686_v2 = vmul.f32 %v2518_v29, %v2984_v60 }
 0x174   : > { %v1684_v46 = vmul.f32 %v2520_v55, %v2991_v56 }
 0x175   : > { %v2177_v45 = vpack.c.bf16 %v1686_v2, %v1686_v2  ;;  %v2522_v61 = vpop.eup %2521 }
 0x176   : > { %v2175_v11 = vpack.c.bf16 %v1684_v46, %v1684_v46  ;;  %v1689_v6 = vmul.f32 %v2522_v61, %v3002_v20 }
 0x177   : > { %1847 = vst.msk [vmem:[%s2851_s29 + $0x6c] sm:$0xf] %vm1819_vm3, %v2177_v45 }
 0x178   : > { %1845 = vst.msk [vmem:[%s2851_s29 + $0x64] sm:$0xf] %vm1819_vm3, %v2175_v11  ;;  %v2180_v30 = vpack.c.bf16 %v1689_v6, %v1689_v6 }
 0x179   : > { %v2524_v50 = vpop.eup %2523 }
 0x17a   : > { %1850 = vst.msk [vmem:[%s2851_s29 + $0x78] sm:$0xf] %vm1819_vm3, %v2180_v30  ;;  %v1687_v60 = vmul.f32 %v2524_v50, %v3008_v53 }
 0x17b   : > { %v2526_v12 = vpop.eup %2525 }
 0x17c   : > { %v2528_v56 = vpop.eup %2527  ;;  %v2178_v14 = vpack.c.bf16 %v1687_v60, %v1687_v60  ;;  %v1690_v15 = vmul.f32 %v2526_v12, %v3012_v28 }
 0x17d   : > { %v1688_v21 = vmul.f32 %v2528_v56, %v3020_v31 }
 0x17e   : > { %1848 = vst.msk [vmem:[%s2851_s29 + $0x70] sm:$0xf] %vm1819_vm3, %v2178_v14  ;;  %v2181_v25 = vpack.c.bf16 %v1690_v15, %v1690_v15 }
 0x17f   : > { %v2179_v16 = vpack.c.bf16 %v1688_v21, %v1688_v21 }
 0x180   : > { %1851 = vst.msk [vmem:[%s2851_s29 + $0x7c] sm:$0xf] %vm1819_vm3, %v2181_v25 }
 0x181   : > { %1849 = vst.msk [vmem:[%s2851_s29 + $0x74] sm:$0xf] %vm1819_vm3, %v2179_v16 }
 0x182 PF: > { %s13_s12 = sadd.s32 1, %s2535_s12  }
 0x183   : > { %p10_p4 = scmp.ge.s32.totalorder %s13_s12, 4  }
 0x185   :  { %12 = sbr.rel (!%p10_p4) target bundleno = 1 (0x1), region = 66 }

</bundles_post_ra>
